<compile_context>
chip_gen: v5e
topology: v5e:2x2
jax: 0.10.0
libtpu: 0.0.40
codegen_flags: <defaults>
</compile_context>

<pallas_src>
import jax
import jax.numpy as jnp
from jax import lax
from jax.experimental import pallas as pl
from jax.experimental.pallas import tpu as pltpu


_LANES = 128            # lane width of the flat view (groups of 4 lanes = 1 batch elem)
_SUB_ROWS = 256         # rows per inner compute chunk (keeps temporaries small)
_MAX_BLOCK_ROWS = 4096  # 2 MiB f32 per (rows, 128) buffer -> ~4 MiB payload / grid step
_FAST_PATH_ELEMS = 16384  # below this (B*4) just use plain XLA


def _round_up(n, m):
    return ((n + m - 1) // m) * m


def _model_kernel(w_ref, b_ref, x_ref, o_ref):
    # w_ref : (4,) f32 SMEM, row-major torch Linear weight [w00, w01, w10, w11] (w[o, f]).
    # b_ref : (2,) f32 SMEM bias.
    # x_ref : (BR, 128) f32 VMEM.  Flattened natural layout of x: lane l of the
    #         flat stream has feature index f = l % 4, i.e. consecutive lanes
    #         are [x00, x01, x10, x11] of one batch element.
    # o_ref : (BR, 128) f32, same natural layout for (v0 + v0^T).
    br, c = x_ref.shape

    w00 = w_ref[0]
    w01 = w_ref[1]
    w10 = w_ref[2]
    w11 = w_ref[3]
    b0 = b_ref[0]
    b1 = b_ref[1]

    sub = min(_SUB_ROWS, br)          # wrapper guarantees br % sub == 0
    n_sub = br // sub

    # Lane-feature masks (hoisted out of the chunk loop).
    lane_f = lax.broadcasted_iota(jnp.int32, (sub, c), 1) & 3
    m0 = lane_f == 0
    m1 = lane_f == 1
    m2 = lane_f == 2

    def body(i, carry):
        r0 = pl.multiple_of(i * sub, 8)
        x0 = x_ref[pl.ds(r0, sub), :]
        # Neighbours within each group of 4 lanes (pure XLU lane rotates; the
        # wrapped-around lanes are never selected by the masks below).
        xm1 = pltpu.roll(x0, shift=1, axis=1)       # x[l-1]
        xm2 = pltpu.roll(x0, shift=2, axis=1)       # x[l-2]
        xp1 = pltpu.roll(x0, shift=c - 1, axis=1)   # x[l+1]
        xp2 = pltpu.roll(x0, shift=c - 2, axis=1)   # x[l+2]

        # Linear(2,2) + symmetrization, evaluated per lane at its own alignment:
        #   f==0: 2*(x[l]  *w00 + x[l+1]*w01 + b0)
        #   f==1: (x[l-1]*w10 + x[l]  *w11 + b1) + (x[l+1]*w00 + x[l+2]*w01 + b0)
        #   f==2: (x[l-2]*w10 + x[l-1]*w11 + b1) + (x[l]  *w00 + x[l+1]*w01 + b0)
        #   f==3: 2*(x[l-1]*w10 + x[l]  *w11 + b1)
        d0 = x0 * w00 + xp1 * w01 + b0
        d1 = xm1 * w10 + x0 * w11 + b1
        o_f0 = 2.0 * d0
        o_f1 = d1 + (xp1 * w00 + xp2 * w01 + b0)
        o_f2 = (xm2 * w10 + xm1 * w11 + b1) + d0
        o_f3 = 2.0 * d1

        out = jnp.where(m0, o_f0, jnp.where(m1, o_f1, jnp.where(m2, o_f2, o_f3)))
        o_ref[pl.ds(r0, sub), :] = out              # full-tile, lane-dense store
        return carry

    lax.fori_loop(0, n_sub, body, 0)


def model_forward(x, w, b, *, force_pallas=False):
    """x: (B, 2, 2), w: (2, 2) torch.nn.Linear weight [out, in], b: (2,) bias."""
    B, S, F = x.shape
    assert S == 2 and F == 2, "module is Linear(2, 2) over (B, 2, 2) inputs"
    out_dtype = x.dtype

    xf = x.astype(jnp.float32)
    wf = w.astype(jnp.float32)
    bf = b.astype(jnp.float32)

    N = B * 4

    # Small-batch fast path: kernel launch / lane padding would dominate.
    if N < _FAST_PATH_ELEMS and not force_pallas:
        v0 = xf[..., 0:1] * wf[:, 0] + xf[..., 1:2] * wf[:, 1] + bf
        return (v0 + jnp.swapaxes(v0, 1, 2)).astype(out_dtype)

    # Natural-layout flat view: rows x 128 lanes, feature = lane % 4.
    C = _LANES
    R = pl.cdiv(N, C)
    R8 = _round_up(R, 8)
    if R8 <= 16:
        BR = R8                                    # single tiny block
    else:
        # >=2 blocks (v7x megacore) and at most ~2 MiB per buffer.
        nb_target = max(2, pl.cdiv(R8, _MAX_BLOCK_ROWS))
        BR = _round_up(pl.cdiv(R8, nb_target), 8)
        if BR > _SUB_ROWS:
            BR = _round_up(BR, _SUB_ROWS)          # keep br % sub == 0 in the kernel
    R_pad = _round_up(R8, BR)
    num_blocks = R_pad // BR

    x_flat = xf.reshape(-1)                        # free (row-major contiguous)
    pad = R_pad * C - N
    if pad:
        x_flat = jnp.pad(x_flat, (0, pad))         # padded tail computes garbage, sliced off
    x2d = x_flat.reshape(R_pad, C)

    out2d = pl.pallas_call(
        _model_kernel,
        out_shape=jax.ShapeDtypeStruct((R_pad, C), jnp.float32),
        grid=(num_blocks,),
        in_specs=[
            pl.BlockSpec(memory_space=pltpu.MemorySpace.SMEM),   # weights (scalars)
            pl.BlockSpec(memory_space=pltpu.MemorySpace.SMEM),   # bias (scalars)
            pl.BlockSpec((BR, C), lambda i: (i, 0)),             # x slab, natural layout
        ],
        out_specs=pl.BlockSpec((BR, C), lambda i: (i, 0)),
        compiler_params=pltpu.CompilerParams(
            dimension_semantics=("parallel",),                   # independent batch blocks
            vmem_limit_bytes=32 * 1024 * 1024,
        ),
    )(wf.reshape(-1), bf, x2d)

    out_flat = out2d.reshape(-1)
    if pad:
        out_flat = out_flat[:N]
    return out_flat.reshape(B, S, F).astype(out_dtype)


def _reference(x, w, b):
    # v0[b,s,o] = x[b,s,0]*w[o,0] + x[b,s,1]*w[o,1] + b[o];  out = v0 + v0^T
    v0 = x[..., 0:1] * w[:, 0] + x[..., 1:2] * w[:, 1] + b
    return v0 + jnp.swapaxes(v0, 1, 2)


if __name__ == "__main__":
    key = jax.random.PRNGKey(0)
    kx, kw, kb, kx2, kx3 = jax.random.split(key, 5)

    bound = 1.0 / jnp.sqrt(2.0)
    w = jax.random.uniform(kw, (2, 2), jnp.float32, -bound, bound)
    b = jax.random.uniform(kb, (2,), jnp.float32, -bound, bound)

    # Spec shape (1, 2, 2): force the Pallas path so the kernel definitely runs.
    x1 = jax.random.normal(kx, (1, 2, 2), dtype=jnp.float32)
    out1 = jax.block_until_ready(model_forward(x1, w, b, force_pallas=True))
    ref1 = _reference(x1, w, b)
    assert out1.shape == (1, 2, 2)
    assert jnp.allclose(out1, ref1, atol=1e-5, rtol=1e-5)

    # Small-batch fast path (bypasses Pallas by design).
    out1f = jax.block_until_ready(model_forward(x1, w, b))
    assert jnp.allclose(out1f, ref1, atol=1e-5, rtol=1e-5)

    # Unaligned batch through the kernel (exercises padding / slice-off).
    x2 = jax.random.normal(kx2, (300, 2, 2), dtype=jnp.float32)
    out2 = jax.block_until_ready(model_forward(x2, w, b, force_pallas=True))
    assert out2.shape == (300, 2, 2)
    assert jnp.allclose(out2, _reference(x2, w, b), atol=1e-5, rtol=1e-5)

    # Larger batch: natural Pallas path, >=2 parallel grid blocks.
    x3 = jax.random.normal(kx3, (20000, 2, 2), dtype=jnp.float32)
    out3 = jax.block_until_ready(model_forward(x3, w, b))
    assert out3.shape == (20000, 2, 2)
    assert jnp.allclose(out3, _reference(x3, w, b), atol=1e-5, rtol=1e-5)

    print("KERNEL_OK")
</pallas_src>

<mosaic_0001>
module attributes {stable_mosaic.version = 11 : i64} {
  func.func @_model_kernel(%arg0: i32, %arg1: memref<4xf32, #tpu.memory_space<smem>>, %arg2: memref<2xf32, #tpu.memory_space<smem>>, %arg3: memref<8x128xf32, #tpu.memory_space<vmem>>, %arg4: memref<8x128xf32, #tpu.memory_space<vmem>>) attributes {dimension_semantics = [#tpu.dimension_semantics<parallel>], iteration_bounds = array<i64: 1>, scalar_prefetch = 0 : i64, scratch_operands = 0 : i64, tpu.core_type = #tpu.core_type<tc>, window_params = [{transform_indices = @transform_0, window_bounds = array<i64: 4>}, {transform_indices = @transform_1, window_bounds = array<i64: 2>}, {transform_indices = @transform_2, window_bounds = array<i64: 8, 128>}, {transform_indices = @transform_3, window_bounds = array<i64: 8, 128>}]} {
    %c0 = arith.constant 0 : index
    %0 = memref.load %arg1[%c0] : memref<4xf32, #tpu.memory_space<smem>>
    %c1 = arith.constant 1 : index
    %1 = memref.load %arg1[%c1] : memref<4xf32, #tpu.memory_space<smem>>
    %c2 = arith.constant 2 : index
    %2 = memref.load %arg1[%c2] : memref<4xf32, #tpu.memory_space<smem>>
    %c3 = arith.constant 3 : index
    %3 = memref.load %arg1[%c3] : memref<4xf32, #tpu.memory_space<smem>>
    %c0_0 = arith.constant 0 : index
    %4 = memref.load %arg2[%c0_0] : memref<2xf32, #tpu.memory_space<smem>>
    %c1_1 = arith.constant 1 : index
    %5 = memref.load %arg2[%c1_1] : memref<2xf32, #tpu.memory_space<smem>>
    %6 = tpu.iota {dimensions = array<i32: 1>} : vector<8x128xi32>
    %c3_i32 = arith.constant 3 : i32
    %7 = vector.broadcast %c3_i32 : i32 to vector<8x128xi32>
    %8 = arith.andi %6, %7 : vector<8x128xi32>
    %c0_i32 = arith.constant 0 : i32
    %9 = vector.broadcast %c0_i32 : i32 to vector<8x128xi32>
    %10 = arith.cmpi eq, %8, %9 : vector<8x128xi32>
    %c1_i32 = arith.constant 1 : i32
    %11 = vector.broadcast %c1_i32 : i32 to vector<8x128xi32>
    %12 = arith.cmpi eq, %8, %11 : vector<8x128xi32>
    %c2_i32 = arith.constant 2 : i32
    %13 = vector.broadcast %c2_i32 : i32 to vector<8x128xi32>
    %14 = arith.cmpi eq, %8, %13 : vector<8x128xi32>
    %c0_i32_2 = arith.constant 0 : i32
    %c8_i32 = arith.constant 8 : i32
    %15 = arith.muli %c0_i32_2, %c8_i32 : i32
    %16 = tpu.assume_multiple %15, 8 : i32
    %17 = arith.index_cast %16 : i32 to index
    %c0_3 = arith.constant 0 : index
    %18 = vector.load %arg3[%17, %c0_3] : memref<8x128xf32, #tpu.memory_space<vmem>>, vector<8x128xf32>
    %c1_i32_4 = arith.constant 1 : i32
    %19 = tpu.dynamic_rotate %18 by %c1_i32_4 dim 1 : vector<8x128xf32>, i32 -> vector<8x128xf32>
    %c2_i32_5 = arith.constant 2 : i32
    %20 = tpu.dynamic_rotate %18 by %c2_i32_5 dim 1 : vector<8x128xf32>, i32 -> vector<8x128xf32>
    %c127_i32 = arith.constant 127 : i32
    %21 = tpu.dynamic_rotate %18 by %c127_i32 dim 1 : vector<8x128xf32>, i32 -> vector<8x128xf32>
    %c126_i32 = arith.constant 126 : i32
    %22 = tpu.dynamic_rotate %18 by %c126_i32 dim 1 : vector<8x128xf32>, i32 -> vector<8x128xf32>
    %23 = vector.broadcast %0 : f32 to vector<8x128xf32>
    %24 = arith.mulf %18, %23 : vector<8x128xf32>
    %25 = vector.broadcast %1 : f32 to vector<8x128xf32>
    %26 = arith.mulf %21, %25 : vector<8x128xf32>
    %27 = arith.addf %24, %26 : vector<8x128xf32>
    %28 = vector.broadcast %4 : f32 to vector<8x128xf32>
    %29 = arith.addf %27, %28 : vector<8x128xf32>
    %30 = vector.broadcast %2 : f32 to vector<8x128xf32>
    %31 = arith.mulf %19, %30 : vector<8x128xf32>
    %32 = vector.broadcast %3 : f32 to vector<8x128xf32>
    %33 = arith.mulf %18, %32 : vector<8x128xf32>
    %34 = arith.addf %31, %33 : vector<8x128xf32>
    %35 = vector.broadcast %5 : f32 to vector<8x128xf32>
    %36 = arith.addf %34, %35 : vector<8x128xf32>
    %cst = arith.constant 2.000000e+00 : f32
    %37 = vector.broadcast %cst : f32 to vector<8x128xf32>
    %38 = arith.mulf %37, %29 : vector<8x128xf32>
    %39 = vector.broadcast %0 : f32 to vector<8x128xf32>
    %40 = arith.mulf %21, %39 : vector<8x128xf32>
    %41 = vector.broadcast %1 : f32 to vector<8x128xf32>
    %42 = arith.mulf %22, %41 : vector<8x128xf32>
    %43 = arith.addf %40, %42 : vector<8x128xf32>
    %44 = vector.broadcast %4 : f32 to vector<8x128xf32>
    %45 = arith.addf %43, %44 : vector<8x128xf32>
    %46 = arith.addf %36, %45 : vector<8x128xf32>
    %47 = vector.broadcast %2 : f32 to vector<8x128xf32>
    %48 = arith.mulf %20, %47 : vector<8x128xf32>
    %49 = vector.broadcast %3 : f32 to vector<8x128xf32>
    %50 = arith.mulf %19, %49 : vector<8x128xf32>
    %51 = arith.addf %48, %50 : vector<8x128xf32>
    %52 = vector.broadcast %5 : f32 to vector<8x128xf32>
    %53 = arith.addf %51, %52 : vector<8x128xf32>
    %54 = arith.addf %53, %29 : vector<8x128xf32>
    %cst_6 = arith.constant 2.000000e+00 : f32
    %55 = vector.broadcast %cst_6 : f32 to vector<8x128xf32>
    %56 = arith.mulf %55, %36 : vector<8x128xf32>
    %57 = arith.select %14, %54, %56 : vector<8x128xi1>, vector<8x128xf32>
    %58 = arith.select %12, %46, %57 : vector<8x128xi1>, vector<8x128xf32>
    %59 = arith.select %10, %38, %58 : vector<8x128xi1>, vector<8x128xf32>
    %60 = arith.index_cast %16 : i32 to index
    %c0_7 = arith.constant 0 : index
    %61 = vector.load %arg4[%60, %c0_7] : memref<8x128xf32, #tpu.memory_space<vmem>>, vector<8x128xf32>
    tpu.vector_store %arg4[%60, %c0_7], %59 {strides = array<i32>} : memref<8x128xf32, #tpu.memory_space<vmem>>, vector<8x128xf32>,
    %c1_i32_8 = arith.constant 1 : i32
    return
  }
  func.func @transform_0(%arg0: i32) -> i32 {
    %c0_i32 = arith.constant 0 : i32
    %c0_i32_0 = arith.constant 0 : i32
    return %c0_i32 : i32
  }
  func.func @transform_1(%arg0: i32) -> i32 {
    %c0_i32 = arith.constant 0 : i32
    %c0_i32_0 = arith.constant 0 : i32
    return %c0_i32 : i32
  }
  func.func @transform_2(%arg0: i32) -> (i32, i32) {
    %c0_i32 = arith.constant 0 : i32
    %c0_i32_0 = arith.constant 0 : i32
    return %arg0, %c0_i32 : i32, i32
  }
  func.func @transform_3(%arg0: i32) -> (i32, i32) {
    %c0_i32 = arith.constant 0 : i32
    %c0_i32_0 = arith.constant 0 : i32
    return %arg0, %c0_i32 : i32, i32
  }
}

</mosaic_0001>

<bundles_post_ra>
// kernel: tpu_custom_call.1
= control target key start
LH: loop header
LB: loop body
LE: loop exit
PB: predicated region body
PF: predicated region fallthrough
CT: control target
= control target key end

     0   :  { %8 = vsyncpa [#allocation5], 0  ;;  %s256_s0 = inlined_call_operand.hbm [shape: f32[4], index: 0, kind: input, shape index: {}]   ;;  %s257_s1 = inlined_call_operand.hbm [shape: f32[2], index: 1, kind: input, shape index: {}]   ;;  %s258_s2 = inlined_call_operand.hbm [shape: f32[8,128], index: 2, kind: input, shape index: {}]   ;;  %s259_s3 = inlined_call_operand.hbm [shape: f32[8,128], index: 3, kind: output, shape index: {}]  }
   0x1   :  { %9 = vsyncpa [#allocation7], 0 }
   0x2   :  { %10 = vsyncpa [#allocation3], 0 }
   0x3   :  { %11 = vsyncpa [#allocation4], 0  ;;  %s17_s14 = sshll.u32 %s256_s0, 4  ;;  %s26_s17 = sshll.u32 %s257_s1, 4  ;;  %s18_s14 = int_to_ptr.hbm [resolvable:$true] %s17_s14  ;;  %s27_s17 = int_to_ptr.hbm [resolvable:$true] %s26_s17 }
   0x4   :  { %s216_s18 = smov [#allocation2]   ;;  %s217_s19 = smov [#allocation6]  }
   0x5   :  { %20 = dma.hbm_to_smem %s18_s14, 16, %s216_s18, [#allocation5]  }
   0x6   :  { %29 = dma.hbm_to_smem %s27_s17, 16, %s217_s19, [#allocation7]  }
   0x7   :  { %s35_s22 = sshll.u32 %s258_s2, 4  ;;  %s218_s23 = smov [#allocation8]   ;;  %s36_s22 = int_to_ptr.hbm [resolvable:$true] %s35_s22 }
   0x8   :  { %s37_s24 = sshll.u32 %s218_s23, 4  ;;  %s38_s24 = int_to_ptr.vmem [resolvable:$true] %s37_s24 }
   0x9   :  { %40 = dma.hbm_to_vmem [thread:$0]  %s36_s22, 128, %s38_s24, [#allocation3]  }
   0xa   :  { %208 = dma.done.wait [#allocation5], 16  }
   0xb   :  { %209 = vsyncadd [#allocation5], 4294967280 }
   0xc   :  { %210 = dma.done.wait [#allocation7], 16  }
   0xd   :  { %211 = vsyncadd [#allocation7], 4294967280 }
   0xe   :  { %212 = dma.done.wait [#allocation3], 128  }
   0xf   :  { %213 = vsyncadd [#allocation3], 4294967168 }
  0x10   :  { %53 = sfence }
  0x11   :  { %v66_v0 = vld [vmem:[#allocation8] sm:$0xff]  ;;  %s219_s0 = smov 127   ;;  %s220_s1 = smov 1   ;;  %v60_v7 = vlaneseq }
  0x12   :  { %71 = vrot.lane.b32.xlu1 %v66_v0, %s219_s0  ;;  %67 = vrot.lane.b32.xlu0 %v66_v0, %s220_s1  ;;  %s221_s25 = smov 126   ;;  %s222_s2 = smov 2  }
  0x13   :  { %s126_s26 = sld [smem:[#allocation2 + $0x3]]  ;;  %v61_v12 = vand.u32 127, %v60_v7  ;;  %s223_s5 = smov [#allocation9]  }
  0x14   :  { %s125_s27 = sld [smem:[#allocation2 + $0x2]]  ;;  %s110_s6 = sshll.u32 %s223_s5, 4  ;;  %s111_s6 = int_to_ptr.vmem [resolvable:$true] %s110_s6 }
  0x15   :  { %s54_s28 = sld [smem:[#allocation2]]  ;;  %v62_v23 = vand.u32 3, %v61_v12  ;;  %s112_s9 = sshll.u32 %s259_s3, 4  ;;  %s113_s9 = int_to_ptr.hbm [resolvable:$true] %s112_s9 }
  0x16   :  { %s124_s29 = sld [smem:[#allocation2 + $0x1]] }
  0x17   :  { %s127_s30 = sld [smem:[#allocation6 + $0x1]]  ;;  %vm65_vm0 = vcmp.eq.s32.totalorder %v62_v23, 2  ;;  %vm64_vm1 = vcmp.eq.s32.totalorder %v62_v23, 1  ;;  %vm63_vm2 = vcmp.eq.s32.totalorder %v62_v23, 0 }
  0x18   :  { %s58_s4 = sld [smem:[#allocation6]] }
  0x19   :  { %v84_v3 = vstv %s126_s26 }
  0x1a   :  { %73 = vrot.lane.b32.xlu1 %v66_v0, %s221_s25  ;;  %69 = vrot.lane.b32.xlu0 %v66_v0, %s222_s2  ;;  %v82_v4 = vstv %s125_s27  ;;  %v85_v8 = vmul.f32 %v84_v3, %v66_v0 }
  0x1b   :  { %v75_v5 = vstv %s54_s28 }
  0x1c   :  { %v77_v6 = vstv %s124_s29  ;;  %v76_v10 = vmul.f32 %v75_v5, %v66_v0 }
  0x1d   :  { %v87_v17 = vstv %s127_s30 }
  0x1e   :  { %v80_v22 = vstv %s58_s4 }
  0x84   :  { %v72_v1 = vpop.permute.xlu1 %71  ;;  %v68_v2 = vpop.permute.xlu0 %67 }
  0x85   :  { %v83_v9 = vmul.f32 %v82_v4, %v68_v2  ;;  %v78_v11 = vmul.f32 %v77_v6, %v72_v1  ;;  %v90_v14 = vmul.f32 %v75_v5, %v72_v1  ;;  %v96_v18 = vmul.f32 %v84_v3, %v68_v2 }
  0x87   :  { %v86_v13 = vadd.f32 %v85_v8, %v83_v9  ;;  %v79_v19 = vadd.f32 %v78_v11, %v76_v10 }
  0x89   :  { %v88_v25 = vadd.f32 %v87_v17, %v86_v13  ;;  %v81_v27 = vadd.f32 %v80_v22, %v79_v19 }
  0x8b   :  { %v100_v32 = vmul.f32 2.0, %v88_v25  ;;  %v89_v33 = vmul.f32 2.0, %v81_v27 }
  0x8c   :  { %v74_v15 = vpop.permute.xlu1 %73  ;;  %v70_v16 = vpop.permute.xlu0 %69 }
  0x8d   :  { %v91_v20 = vmul.f32 %v77_v6, %v74_v15  ;;  %v95_v21 = vmul.f32 %v82_v4, %v70_v16 }
  0x8f   :  { %v92_v24 = vadd.f32 %v91_v20, %v90_v14  ;;  %v97_v26 = vadd.f32 %v96_v18, %v95_v21 }
  0x91   :  { %v93_v28 = vadd.f32 %v92_v24, %v80_v22  ;;  %v98_v29 = vadd.f32 %v97_v26, %v87_v17 }
  0x93   :  { %v94_v30 = vadd.f32 %v93_v28, %v88_v25  ;;  %v99_v31 = vadd.f32 %v98_v29, %v81_v27 }
  0x95   :  { %v101_v34 = vsel %vm65_vm0, %v99_v31, %v100_v32 }
  0x96   :  { %v102_v35 = vsel %vm64_vm1, %v94_v30, %v101_v34 }
  0x97   :  { %v103_v36 = vsel %vm63_vm2, %v89_v33, %v102_v35 }
  0x98   :  { %104 = vst [vmem:[#allocation9] sm:$0xff] %v103_v36 }
  0x99   :  { %115 = dma.vmem_to_hbm [thread:$0]  %s111_s6, 128, %s113_s9, [#allocation4]  }
  0x9a   :  { %214 = dma.done.wait [#allocation4], 128  }
  0x9b   :  { %215 = vsyncadd [#allocation4], 4294967168 }
  0x9c   :  { %120 = vsyncpa [#allocation3], 1 }
  0x9d   :  { %121 = vsyncpa [#allocation4], 1 }
  0x9e   :  { %122 = vsyncpa [#allocation5], 1 }
  0x9f   :  { %123 = vsyncpa [#allocation7], 1 }

</bundles_post_ra>
